<compile_context>
chip_gen: v6e
topology: v6e:2x2x1
jax: 0.10.0
libtpu: 0.0.40
codegen_flags: <defaults>
</compile_context>

<pallas_src>
import jax
import jax.numpy as jnp
from jax.experimental import pallas as pl
from jax.experimental.pallas import tpu as pltpu

EPS = 1e-5

_P1_TILE_CAP = 16 * 1024 * 1024   # pass 1: only the input tile is double-buffered
_P2_TILE_CAP = 8 * 1024 * 1024    # pass 2: input + output tiles double-buffered
_VMEM_SLACK = 8 * 1024 * 1024     # headroom for a/b, in-kernel temps, compiler scratch


def _round_up(x, m):
    return ((x + m - 1) // m) * m


def _largest_divisor_leq(n, limit):
    limit = max(1, min(n, int(limit)))
    for d in range(limit, 0, -1):
        if n % d == 0:
            return d
    return 1


def _vmem_limit_bytes():
    """Scoped-VMEM limit: generous on v5e/v6e (128 MiB physical), safe on v7x (64 MiB)."""
    cap = 128 * 1024 * 1024
    try:
        info = pltpu.get_tpu_info()
        cap = int(getattr(info, "vmem_capacity_bytes", cap))
    except Exception:
        pass
    return max(min(int(cap * 0.7), 64 * 1024 * 1024), 32 * 1024 * 1024)


def _choose_pass_tiles(N, C, hw_pad, itemsize, budget, min_batch_steps=1):
    """Pick (tn, thw): lane-dense tiles dividing (N, hw_pad) that fit `budget`."""
    groups = hw_pad // 128
    lane_groups = max(1, budget // (C * 128 * itemsize))
    # TODO(synk): if `groups` is prime this degrades to 128-wide tiles; a cdiv
    #             grid with masked edge tiles would avoid the cliff.
    g = _largest_divisor_leq(groups, lane_groups)
    thw = g * 128
    tn_cap = max(1, budget // (C * thw * itemsize))
    if min_batch_steps > 1 and N >= min_batch_steps:
        # Keep >= 2 iterations on the parallel axis so both v7x TensorCores work.
        tn_cap = min(tn_cap, N // min_batch_steps)
    tn = _largest_divisor_leq(N, max(1, tn_cap))
    return tn, thw


def _stats_kernel(x_ref, sum_ref, sq_ref):
    # x_ref: (TN, C, THW). sum_ref / sq_ref: (1, C, 1) f32 accumulators resident
    # across the inner (HW-tile) reduction axis.
    @pl.when(pl.program_id(1) == 0)
    def _():
        sum_ref[...] = jnp.zeros_like(sum_ref)
        sq_ref[...] = jnp.zeros_like(sq_ref)

    x = x_ref[...].astype(jnp.float32)
    s = jnp.sum(x, axis=2, keepdims=True)            # lane reduce -> (TN, C, 1)
    sq = jnp.sum(x * x, axis=2, keepdims=True)
    sum_ref[...] += jnp.sum(s, axis=0, keepdims=True)
    sq_ref[...] += jnp.sum(sq, axis=0, keepdims=True)


def _apply_kernel(x_ref, a_ref, b_ref, o_ref):
    # y = x * a + b with per-channel a, b broadcast along batch + lane axes.
    a = a_ref[...][None, :, :]                        # (1, C, 1)
    b = b_ref[...][None, :, :]
    o_ref[...] = (x_ref[...].astype(jnp.float32) * a + b).astype(o_ref.dtype)


def _make_fused_kernel(count):
    """Single-pass kernel: whole (N, C, HW) resident in VMEM."""
    def kernel(x_ref, g_ref, b_ref, o_ref):
        x = x_ref[...].astype(jnp.float32)
        s = jnp.sum(jnp.sum(x, axis=2, keepdims=True), axis=0, keepdims=True)
        sq = jnp.sum(jnp.sum(x * x, axis=2, keepdims=True), axis=0, keepdims=True)
        mean = s / count
        var = jnp.maximum(sq / count - mean * mean, 0.0)
        a = g_ref[...][None, :, :] * jax.lax.rsqrt(var + EPS)
        b = b_ref[...][None, :, :] - mean * a
        o_ref[...] = (x * a + b).astype(o_ref.dtype)
    return kernel


def my_batch_norm(x_nchw, gamma, beta, *, force_two_pass=False):
    """Training-mode BatchNorm2d forward. x: (N, C, H, W); gamma, beta: (C,)."""
    N, C, H, W = x_nchw.shape
    HW = H * W
    hw_pad = _round_up(HW, 128)
    itemsize = x_nchw.dtype.itemsize

    x3 = x_nchw.reshape(N, C, HW)                    # free reshape, stays NCHW order
    if hw_pad != HW:
        # TODO(synk): zero-padding costs one extra copy of x (and a slice of y);
        #             masked edge tiles would remove it for non-128-aligned H*W.
        x3 = jnp.pad(x3, ((0, 0), (0, 0), (0, hw_pad - HW)))

    vmem_limit = _vmem_limit_bytes()
    count = float(N * HW)                            # padded zeros add nothing to sums
    g2 = gamma.reshape(C, 1).astype(jnp.float32)
    b2 = beta.reshape(C, 1).astype(jnp.float32)

    # ---- Fused single-pass path (1 read + 1 write) for small/medium activations.
    fused_bytes = N * C * hw_pad * (2 * itemsize + 16)   # in + out + f32 temps
    if not force_two_pass and fused_bytes <= vmem_limit - _VMEM_SLACK:
        y3 = pl.pallas_call(
            _make_fused_kernel(count),
            out_shape=jax.ShapeDtypeStruct((N, C, hw_pad), x3.dtype),
            in_specs=[pl.BlockSpec(memory_space=pltpu.MemorySpace.VMEM)] * 3,
            out_specs=pl.BlockSpec(memory_space=pltpu.MemorySpace.VMEM),
            compiler_params=pltpu.CompilerParams(vmem_limit_bytes=vmem_limit),
        )(x3, g2, b2)
    else:
        # ---- Two streamed passes (2 reads + 1 write), per-pass tile sizing.
        p1_budget = min(_P1_TILE_CAP, max(1 << 20, (vmem_limit - _VMEM_SLACK) // 2))
        p2_budget = min(_P2_TILE_CAP, max(1 << 20, (vmem_limit - _VMEM_SLACK) // 4))
        tn1, thw1 = _choose_pass_tiles(N, C, hw_pad, itemsize, p1_budget,
                                       min_batch_steps=2)
        tn2, thw2 = _choose_pass_tiles(N, C, hw_pad, itemsize, p2_budget)
        grid1 = (N // tn1, hw_pad // thw1)
        grid2 = (N // tn2, hw_pad // thw2)

        # Pass 1: per-channel sum / sum-of-squares (partial per batch tile).
        sum_out, sq_out = pl.pallas_call(
            _stats_kernel,
            out_shape=(jax.ShapeDtypeStruct((grid1[0], C, 1), jnp.float32),
                       jax.ShapeDtypeStruct((grid1[0], C, 1), jnp.float32)),
            grid_spec=pltpu.PrefetchScalarGridSpec(
                num_scalar_prefetch=0,
                grid=grid1,
                in_specs=[pl.BlockSpec((tn1, C, thw1), lambda ni, t: (ni, 0, t))],
                out_specs=[pl.BlockSpec((1, C, 1), lambda ni, t: (ni, 0, 0)),
                           pl.BlockSpec((1, C, 1), lambda ni, t: (ni, 0, 0))]),
            compiler_params=pltpu.CompilerParams(
                dimension_semantics=("parallel", "arbitrary"),
                vmem_limit_bytes=vmem_limit),
        )(x3)

        # Tiny per-channel math (biased variance, f32 accumulation).
        # TODO(synk): E[x^2]-E[x]^2 can cancel when |mean| >> std; a
        #             mean-subtracted second reduction would be more robust.
        sum_x = jnp.sum(sum_out, axis=0)             # (C, 1)
        sum_x2 = jnp.sum(sq_out, axis=0)             # (C, 1)
        mean = sum_x / count
        var = jnp.maximum(sum_x2 / count - mean * mean, 0.0)
        a = g2 * jax.lax.rsqrt(var + EPS)
        b = b2 - mean * a

        # Pass 2: y = x * a + b, streamed with lane-dense tiling.
        y3 = pl.pallas_call(
            _apply_kernel,
            out_shape=jax.ShapeDtypeStruct((N, C, hw_pad), x3.dtype),
            grid_spec=pltpu.PrefetchScalarGridSpec(
                num_scalar_prefetch=0,
                grid=grid2,
                in_specs=[pl.BlockSpec((tn2, C, thw2), lambda ni, t: (ni, 0, t)),
                          pl.BlockSpec((C, 1), lambda ni, t: (0, 0)),
                          pl.BlockSpec((C, 1), lambda ni, t: (0, 0))],
                out_specs=pl.BlockSpec((tn2, C, thw2), lambda ni, t: (ni, 0, t))),
            compiler_params=pltpu.CompilerParams(
                dimension_semantics=("parallel", "parallel"),
                vmem_limit_bytes=vmem_limit),
        )(x3, a, b)

    if hw_pad != HW:
        y3 = y3[:, :, :HW]
    return y3.reshape(N, C, H, W)


if __name__ == "__main__":
    key = jax.random.PRNGKey(0)
    N, C, H, W = 2, 4, 16, 16
    x = jax.random.normal(key, (N, C, H, W), dtype=jnp.float32)

    # Deterministic BatchNorm2d parameter init (PyTorch defaults): gamma=1, beta=0.
    gamma = jnp.ones((C,), dtype=jnp.float32)
    beta = jnp.zeros((C,), dtype=jnp.float32)

    # Reference: training-mode batch norm with biased variance.
    mean = jnp.mean(x, axis=(0, 2, 3), keepdims=True)
    var = jnp.mean((x - mean) ** 2, axis=(0, 2, 3), keepdims=True)
    ref = (x - mean) / jnp.sqrt(var + EPS) * gamma.reshape(1, C, 1, 1) \
          + beta.reshape(1, C, 1, 1)

    # Exercise both code paths (fused single-pass and streamed two-pass).
    y_fused = jax.block_until_ready(my_batch_norm(x, gamma, beta))
    y_2pass = jax.block_until_ready(my_batch_norm(x, gamma, beta, force_two_pass=True))

    assert y_fused.shape == (N, C, H, W)
    assert jnp.max(jnp.abs(y_fused - ref)) < 1e-4
    assert jnp.max(jnp.abs(y_2pass - ref)) < 1e-4

    print("KERNEL_OK")
</pallas_src>

<mosaic_0001>
module attributes {stable_mosaic.version = 11 : i64} {
  func.func @kernel(%arg0: memref<2x4x256xf32, #tpu.memory_space<vmem>>, %arg1: memref<4x1xf32, #tpu.memory_space<vmem>>, %arg2: memref<4x1xf32, #tpu.memory_space<vmem>>, %arg3: memref<2x4x256xf32, #tpu.memory_space<vmem>>) attributes {dimension_semantics = [], scalar_prefetch = 0 : i64, scratch_operands = 0 : i64, tpu.core_type = #tpu.core_type<tc>} {
    %c0 = arith.constant 0 : index
    %c0_0 = arith.constant 0 : index
    %c0_1 = arith.constant 0 : index
    %0 = vector.load %arg0[%c0, %c0_0, %c0_1] : memref<2x4x256xf32, #tpu.memory_space<vmem>>, vector<2x4x256xf32>
    %cst = arith.constant dense<0.000000e+00> : vector<2x4xf32>
    %1 = vector.multi_reduction <add>, %0, %cst [2] : vector<2x4x256xf32> to vector<2x4xf32>
    %2 = vector.shape_cast %1 : vector<2x4xf32> to vector<2x4x1xf32>
    %cst_2 = arith.constant dense<0.000000e+00> : vector<4x1xf32>
    %3 = vector.multi_reduction <add>, %2, %cst_2 [0] : vector<2x4x1xf32> to vector<4x1xf32>
    %4 = vector.shape_cast %3 : vector<4x1xf32> to vector<1x4x1xf32>
    %5 = arith.mulf %0, %0 : vector<2x4x256xf32>
    %cst_3 = arith.constant dense<0.000000e+00> : vector<2x4xf32>
    %6 = vector.multi_reduction <add>, %5, %cst_3 [2] : vector<2x4x256xf32> to vector<2x4xf32>
    %7 = vector.shape_cast %6 : vector<2x4xf32> to vector<2x4x1xf32>
    %cst_4 = arith.constant dense<0.000000e+00> : vector<4x1xf32>
    %8 = vector.multi_reduction <add>, %7, %cst_4 [0] : vector<2x4x1xf32> to vector<4x1xf32>
    %9 = vector.shape_cast %8 : vector<4x1xf32> to vector<1x4x1xf32>
    %cst_5 = arith.constant 5.120000e+02 : f32
    %10 = vector.broadcast %cst_5 : f32 to vector<1x4x1xf32>
    %11 = arith.divf %4, %10 : vector<1x4x1xf32>
    %cst_6 = arith.constant 5.120000e+02 : f32
    %12 = vector.broadcast %cst_6 : f32 to vector<1x4x1xf32>
    %13 = arith.divf %9, %12 : vector<1x4x1xf32>
    %14 = arith.mulf %11, %11 : vector<1x4x1xf32>
    %15 = arith.subf %13, %14 : vector<1x4x1xf32>
    %cst_7 = arith.constant 0.000000e+00 : f32
    %16 = vector.broadcast %cst_7 : f32 to vector<1x4x1xf32>
    %17 = arith.maximumf %15, %16 : vector<1x4x1xf32>
    %c0_8 = arith.constant 0 : index
    %c0_9 = arith.constant 0 : index
    %18 = vector.load %arg1[%c0_8, %c0_9] : memref<4x1xf32, #tpu.memory_space<vmem>>, vector<4x1xf32>
    %19 = vector.shape_cast %18 : vector<4x1xf32> to vector<1x4x1xf32>
    %cst_10 = arith.constant 9.99999974E-6 : f32
    %20 = vector.broadcast %cst_10 : f32 to vector<1x4x1xf32>
    %21 = arith.addf %17, %20 : vector<1x4x1xf32>
    %22 = math.rsqrt %21 : vector<1x4x1xf32>
    %23 = arith.mulf %19, %22 : vector<1x4x1xf32>
    %c0_11 = arith.constant 0 : index
    %c0_12 = arith.constant 0 : index
    %24 = vector.load %arg2[%c0_11, %c0_12] : memref<4x1xf32, #tpu.memory_space<vmem>>, vector<4x1xf32>
    %25 = vector.shape_cast %24 : vector<4x1xf32> to vector<1x4x1xf32>
    %26 = arith.mulf %11, %23 : vector<1x4x1xf32>
    %27 = arith.subf %25, %26 : vector<1x4x1xf32>
    %28 = vector.broadcast %23 : vector<1x4x1xf32> to vector<2x4x256xf32>
    %29 = arith.mulf %0, %28 : vector<2x4x256xf32>
    %30 = vector.broadcast %27 : vector<1x4x1xf32> to vector<2x4x256xf32>
    %31 = arith.addf %29, %30 : vector<2x4x256xf32>
    %c0_13 = arith.constant 0 : index
    %c0_14 = arith.constant 0 : index
    %c0_15 = arith.constant 0 : index
    %32 = vector.load %arg3[%c0_13, %c0_14, %c0_15] : memref<2x4x256xf32, #tpu.memory_space<vmem>>, vector<2x4x256xf32>
    tpu.vector_store %arg3[%c0_13, %c0_14, %c0_15], %31 {strides = array<i32>} : memref<2x4x256xf32, #tpu.memory_space<vmem>>, vector<2x4x256xf32>,
    return
  }
}

</mosaic_0001>

<bundles_post_ra>
// kernel: tpu_custom_call.1
= control target key start
LH: loop header
LB: loop body
LE: loop exit
PB: predicated region body
PF: predicated region fallthrough
CT: control target
= control target key end

     0   :  { %8 = vsyncpa [#allocation3], 0  ;;  %s260_s0 = inlined_call_operand.hbm [shape: f32[2,4,256], index: 0, kind: input, shape index: {}]   ;;  %s261_s1 = inlined_call_operand.vmem [shape: f32[4,1], index: 1, kind: input, shape index: {}]   ;;  %s262_s2 = inlined_call_operand.vmem [shape: f32[4,1], index: 2, kind: input, shape index: {}]   ;;  %s263_s3 = inlined_call_operand.hbm [shape: f32[2,4,256], index: 3, kind: output, shape index: {}]  }
   0x1   :  { %9 = vsyncpa [#allocation4], 0  ;;  %s188_s12 = smov [#allocation2]  }
   0x2   :  { %s15_s13 = sshll.u32 %s188_s12, 4  ;;  %s16_s13 = int_to_ptr.vmem [resolvable:$true] %s15_s13 }
   0x3   :  { %s152_s14 = scalar_lea.vmem %s16_s13, 256  ;;  %p157_p1 = scmp.lt.s32.totalorder %s16_s13, %s16_s13 }
   0x4   :  { %p153_p0 = scmp.ne.s32.totalorder %s16_s13, %s152_s14  ;;  %p158_p2 = scmp.lt.s32.totalorder %s152_s14, %s152_s14 }
   0x6   :  { %p159_p3 = por %p158_p2, %p157_p1 }
   0x8   :  { %p160_p4 = pnand %p159_p3, %p153_p0 }
   0xa   :  { %163 = shalt.err (!%p160_p4)
}
   0xb   :  { %s189_s15 = smov 128   ;;  %s190_s16 = smov 8  }
   0xc   :  { %21 = dma.hbm_to_vmem [thread:$0]  %s260_s0, 256, %s16_s13, [#allocation3], %s189_s15, %s189_s15, %s190_s16  }
   0xd   :  { %184 = dma.done.wait [#allocation3], 256  }
   0xe   :  { %185 = vsyncadd [#allocation3], 4294967040  ;;  %vm37_vm0 = vcmask 1043456   ;;  %v220_v0 = vld [vmem:[#allocation2] sm:$0xff]  ;;  %v222_v1 = vld [vmem:[#allocation2 + $0x8] sm:$0xff]  ;;  %v191_v20 = vmov 0   ;;  %v92_v45 = vlaneseq }
   0xf   :  { %v33_v2 = vcombine.high %v220_v0, %v220_v0  ;;  %v38_v3 = vsel %vm37_vm0, %v220_v0, 0.0  ;;  %v51_v4 = vmul.f32 %v220_v0, %v220_v0  ;;  %v34_v5 = vcombine.high %v222_v1, %v222_v1  ;;  %138 = vset.pattern.permute.xlu0 %v191_v20  ;;  %139 = vset.pattern.permute.xlu1 %v191_v20  ;;  %v78_v37 = vld [vmem:[%s261_s1] sm:$0xf]  ;;  %s193_s1 = smov [#allocation5]  }
  0x10   :  { %v43_v6 = vsel %vm37_vm0, %v222_v1, 0.0  ;;  %v52_v7 = vmul.f32 %v222_v1, %v222_v1  ;;  %v82_v40 = vld [vmem:[%s262_s2] sm:$0xf]  ;;  %v192_v43 = vmov 839922192   ;;  %v93_v47 = vshrl.u32 %v92_v45, 7 }
  0x11   :  { %v39_v8 = vsel %vm37_vm0, %v33_v2, 0.0  ;;  %v55_v9 = vcombine.high %v51_v4, %v51_v4  ;;  %v59_v10 = vsel %vm37_vm0, %v51_v4, 0.0  ;;  %v44_v11 = vsel %vm37_vm0, %v34_v5, 0.0  ;;  %s120_s22 = sshll.u32 %s193_s1, 4  ;;  %s121_s22 = int_to_ptr.vmem [resolvable:$true] %s120_s22 }
  0x12   :  { %v40_v12 = vadd.f32 %v39_v8, %v38_v3  ;;  %v56_v13 = vcombine.high %v52_v7, %v52_v7  ;;  %v64_v15 = vsel %vm37_vm0, %v52_v7, 0.0  ;;  %v45_v17 = vadd.f32 %v44_v11, %v43_v6  ;;  %s164_s2 = scalar_lea.vmem %s121_s22, 256  ;;  %p169_p6 = scmp.lt.s32.totalorder %s121_s22, %s121_s22 }
  0x13   :  { %v60_v14 = vsel %vm37_vm0, %v55_v9, 0.0  ;;  %v90_v44 = vunpack.c.l.s4 %v192_v43  ;;  %p165_p5 = scmp.ne.s32.totalorder %s121_s22, %s164_s2  ;;  %p170_p7 = scmp.lt.s32.totalorder %s164_s2, %s164_s2 }
  0x14   :  { %41 = vadd.xlane.f32.xlu0 %v40_v12  ;;  %v61_v16 = vadd.f32 %v60_v14, %v59_v10  ;;  %v65_v18 = vsel %vm37_vm0, %v56_v13, 0.0 }
  0x15   :  { %v66_v19 = vadd.f32 %v65_v18, %v64_v15  ;;  %v91_v46 = vunpack.c.0.s8 %v90_v44  ;;  %p171_p8 = por %p170_p7, %p169_p6 }
  0x16   :  { %62 = vadd.xlane.f32.xlu1 %v61_v16 }
  0x17   :  { %v94_v48 = vsub.s32 %v91_v46, %v93_v47  ;;  %p172_p9 = pnand %p171_p8, %p165_p5 }
  0x18   :  { %46 = vadd.xlane.f32.xlu0 %v45_v17 }
  0x1a   :  { %67 = vadd.xlane.f32.xlu1 %v66_v19 }
  0x9d   :  { %v42_v21 = vpop.xlane.xlu0 %41 }
  0x9e   :  { %v48_v24 = vsel %vm37_vm0, %v42_v21, 0.0 }
  0x9f   :  { %v63_v22 = vpop.xlane.xlu1 %62 }
  0xa0   :  { %v69_v28 = vsel %vm37_vm0, %v63_v22, 0.0 }
  0xa1   :  { %v47_v23 = vpop.xlane.xlu0 %46 }
  0xa2   :  { %v49_v25 = vsel %vm37_vm0, %v47_v23, 0.0 }
  0xa3   :  { %v50_v26 = vadd.f32 %v49_v25, %v48_v24  ;;  %v68_v27 = vpop.xlane.xlu1 %67 }
  0xa4   :  { %v70_v29 = vsel %vm37_vm0, %v68_v27, 0.0 }
  0xa5   :  { %v73_v30 = vmul.f32 0.001953125, %v50_v26  ;;  %v71_v31 = vadd.f32 %v70_v29, %v69_v28 }
  0xa7   :  { %v75_v32 = vmul.f32 %v73_v30, %v73_v30  ;;  %v74_v33 = vmul.f32 0.001953125, %v71_v31 }
  0xa9   :  { %v76_v34 = vsub.f32 %v74_v33, %v75_v32 }
  0xab   :  { %v77_v35 = vmax.f32 %v76_v34, 0.0 }
  0xad   :  { %v79_v36 = vadd.f32 1e-05, %v77_v35 }
  0xaf   :  { %142 = vrsqrt.f32 %v79_v36 }
  0xbc   :  { %v143_v38 = vpop.eup %142 }
  0xbd   :  { %v81_v39 = vmul.f32 %v143_v38, %v78_v37 }
  0xbf   :  { %87 = vperm.xlu0 %138, %v81_v39   ;;  %v83_v41 = vmul.f32 %v81_v39, %v73_v30 }
  0xc1   :  { %v84_v42 = vsub.f32 %v82_v40, %v83_v41 }
  0xc3   :  { %101 = vperm.xlu1 %139, %v84_v42  }
 0x13a   :  { %v88_v49 = vpop.permute.xlu0 %87 }
 0x13b   :  { %v95_v50 = vrot.slane %v88_v49, %v94_v48 }
 0x13d   :  { %v97_v52 = vmul.f32 %v95_v50, %v220_v0  ;;  %v98_v53 = vmul.f32 %v95_v50, %v222_v1 }
 0x13e   :  { %v102_v51 = vpop.permute.xlu1 %101 }
 0x13f   :  { %v109_v54 = vrot.slane %v102_v51, %v94_v48 }
 0x141   :  { %v111_v55 = vadd.f32 %v109_v54, %v97_v52  ;;  %v112_v56 = vadd.f32 %v109_v54, %v98_v53 }
 0x143   :  { %113 = vst [vmem:[#allocation5] sm:$0xff] %v111_v55  ;;  %114 = vst [vmem:[#allocation5 + $0x8] sm:$0xff] %v112_v56 }
 0x144   :  { %175 = shalt.err (!%p172_p9)
}
 0x145   :  { %126 = dma.vmem_to_hbm [thread:$0]  %s121_s22, 256, %s263_s3, [#allocation4], %s189_s15, %s189_s15, %s190_s16  }
 0x146   :  { %186 = dma.done.wait [#allocation4], 256  }
 0x147   :  { %187 = vsyncadd [#allocation4], 4294967040 }
 0x148   :  { %130 = vsyncpa [#allocation3], 1 }
 0x149   :  { %131 = vsyncpa [#allocation4], 1 }

</bundles_post_ra>
